<compile_context>
chip_gen: v7x
topology: tpu7x:2x2x1
jax: 0.10.0
libtpu: 0.0.40
codegen_flags: <defaults>
</compile_context>

<pallas_src>
import functools
import math

import jax
import jax.numpy as jnp
from jax import lax
from jax.experimental import pallas as pl
from jax.experimental.pallas import tpu as pltpu

_EPS = 1e-5


# --------------------------------------------------------------------------- #
# helpers
# --------------------------------------------------------------------------- #
def _round_up(n, m):
    return ((n + m - 1) // m) * m


def _choose_row_tile(rows, want=256):
    # Large row tiles amortize per-grid-step overhead; clamp for small inputs.
    return max(8, min(_round_up(want, 8), _round_up(rows, 8)))


def _pad_rows(x2d, row_tile):
    rows = x2d.shape[0]
    n_tiles = pl.cdiv(rows, row_tile)
    padded = n_tiles * row_tile
    if padded != rows:
        x2d = jnp.pad(x2d, ((0, padded - rows), (0, 0)))
    return x2d, n_tiles


def _maybe_vmem_limit(nbytes):
    if nbytes > 30 * 1024 * 1024:
        return min(int(nbytes * 5 // 4), 100 * 1024 * 1024)
    return None


def _vec(a):
    return a.reshape(1, -1).astype(jnp.float32)


def _ln_f32(x, gamma, beta, eps):
    mean = jnp.mean(x, axis=-1, keepdims=True)
    c = x - mean
    var = jnp.mean(c * c, axis=-1, keepdims=True)
    return c * lax.rsqrt(var + eps) * gamma + beta


def _dropout(y, seed_ref, dropout_p):
    # Inverted dropout on an f32 tile; compiled out entirely when p == 0.
    pltpu.prng_seed(seed_ref[0] + pl.program_id(0))
    bits = pltpu.prng_random_bits(y.shape)
    if bits.dtype != jnp.dtype(jnp.uint32):       # trace-time check only
        bits = pltpu.bitcast(bits, jnp.uint32)
    thresh = jnp.uint32(min(int(round(dropout_p * 4294967296.0)), 0xFFFFFFFF))
    return jnp.where(bits >= thresh, y * (1.0 / (1.0 - dropout_p)), 0.0)


# --------------------------------------------------------------------------- #
# kernels
# --------------------------------------------------------------------------- #
def _embed_gelu_kernel(x_ref, w_ref, b_ref, o_ref):
    x = x_ref[...].astype(jnp.bfloat16)
    y = jnp.dot(x, w_ref[...], preferred_element_type=jnp.float32) + b_ref[...]
    o_ref[...] = jax.nn.gelu(y, approximate=True).astype(o_ref.dtype)


def _layernorm_kernel(x_ref, gamma_ref, beta_ref, o_ref, *, eps):
    x = x_ref[...].astype(jnp.float32)
    o_ref[...] = _ln_f32(x, gamma_ref[...], beta_ref[...], eps).astype(o_ref.dtype)


def _ffn_sublayer_kernel(seed_ref, x_ref, gamma_ref, beta_ref, w1_ref, b1_ref,
                         w2_ref, b2_ref, o_ref, *, eps, dropout_p):
    x = x_ref[...].astype(jnp.float32)
    xn = _ln_f32(x, gamma_ref[...], beta_ref[...], eps)
    h = jnp.dot(xn.astype(jnp.bfloat16), w1_ref[...],
                preferred_element_type=jnp.float32) + b1_ref[...]
    h = jnp.maximum(h, 0.0)
    y = jnp.dot(h.astype(jnp.bfloat16), w2_ref[...],
                preferred_element_type=jnp.float32) + b2_ref[...]
    if dropout_p > 0.0:
        y = _dropout(y, seed_ref, dropout_p)
    o_ref[...] = (x + y).astype(o_ref.dtype)


def _attn_sublayer_kernel(seed_ref, x_ref, kv_ref, gamma_ref, beta_ref,
                          wq_ref, bq_ref, wk_ref, bk_ref, wv_ref, bv_ref,
                          wo_ref, bo_ref, o_ref, *, eps, n_heads, dropout_p,
                          self_attention):
    x = x_ref[0].astype(jnp.float32)                                 # (Sq, H)
    xn = _ln_f32(x, gamma_ref[...], beta_ref[...], eps)
    kv = xn if self_attention else kv_ref[0].astype(jnp.float32)     # (Skv, H)
    xn_b = xn.astype(jnp.bfloat16)
    kv_b = kv.astype(jnp.bfloat16)

    sq, h_dim = x.shape
    dk = h_dim // n_heads
    scale = 1.0 / math.sqrt(dk)
    trans_b = (((1,), (1,)), ((), ()))

    # TODO(synk): mask is not supported (forward demo runs with mask=None).
    y = jnp.zeros((sq, h_dim), jnp.float32)
    for h in range(n_heads):                         # static unroll over heads
        q_h = jnp.dot(xn_b, wq_ref[h],
                      preferred_element_type=jnp.float32) + bq_ref[h]
        k_h = jnp.dot(kv_b, wk_ref[h],
                      preferred_element_type=jnp.float32) + bk_ref[h]
        v_h = jnp.dot(kv_b, wv_ref[h],
                      preferred_element_type=jnp.float32) + bv_ref[h]
        s = lax.dot_general(q_h, k_h, trans_b,
                            preferred_element_type=jnp.float32) * scale   # (Sq, Skv)
        s = s - jnp.max(s, axis=-1, keepdims=True)
        e = jnp.exp(s)
        p = e / jnp.sum(e, axis=-1, keepdims=True)
        o_h = jnp.dot(p, v_h, preferred_element_type=jnp.float32)         # (Sq, dk)
        y = y + jnp.dot(o_h.astype(jnp.bfloat16), wo_ref[h],
                        preferred_element_type=jnp.float32)               # (Sq, H)
    y = y + bo_ref[...]
    if dropout_p > 0.0:
        y = _dropout(y, seed_ref, dropout_p)
    o_ref[0] = (x + y).astype(o_ref.dtype)


# --------------------------------------------------------------------------- #
# pallas_call wrappers
# --------------------------------------------------------------------------- #
def embed_gelu(x, w, b, *, row_tile=256):
    """GELU(x @ w + b) for x: (B, S, d_in), w: (d_in, H)."""
    B, S, d_in = x.shape
    H = w.shape[1]
    rows = B * S
    rt = _choose_row_tile(rows, row_tile)
    x2, n_tiles = _pad_rows(x.reshape(rows, d_in).astype(jnp.float32), rt)
    out = pl.pallas_call(
        _embed_gelu_kernel,
        out_shape=jax.ShapeDtypeStruct((n_tiles * rt, H), jnp.float32),
        grid_spec=pltpu.PrefetchScalarGridSpec(
            num_scalar_prefetch=0,
            grid=(n_tiles,),
            in_specs=[
                pl.BlockSpec((rt, d_in), lambda i: (i, 0)),
                pl.BlockSpec((d_in, H), lambda i: (0, 0)),
                pl.BlockSpec((1, H), lambda i: (0, 0)),
            ],
            out_specs=pl.BlockSpec((rt, H), lambda i: (i, 0)),
        ),
        compiler_params=pltpu.CompilerParams(dimension_semantics=("parallel",)),
    )(x2, w.astype(jnp.bfloat16), _vec(b))
    return out[:rows].reshape(B, S, H)


def layernorm(x, ln, *, eps=_EPS, row_tile=256):
    """LayerNorm over the feature axis (AttentionBlock.norm)."""
    B, S, H = x.shape
    rows = B * S
    rt = _choose_row_tile(rows, row_tile)
    x2, n_tiles = _pad_rows(x.reshape(rows, H).astype(jnp.float32), rt)
    out = pl.pallas_call(
        functools.partial(_layernorm_kernel, eps=float(eps)),
        out_shape=jax.ShapeDtypeStruct((n_tiles * rt, H), jnp.float32),
        grid_spec=pltpu.PrefetchScalarGridSpec(
            num_scalar_prefetch=0,
            grid=(n_tiles,),
            in_specs=[
                pl.BlockSpec((rt, H), lambda i: (i, 0)),
                pl.BlockSpec((1, H), lambda i: (0, 0)),
                pl.BlockSpec((1, H), lambda i: (0, 0)),
            ],
            out_specs=pl.BlockSpec((rt, H), lambda i: (i, 0)),
        ),
        compiler_params=pltpu.CompilerParams(dimension_semantics=("parallel",)),
    )(x2, _vec(ln['g']), _vec(ln['b']))
    return out[:rows].reshape(B, S, H)


def ffn_sublayer(x, ln, ffn, *, dropout_p=0.0, eps=_EPS, seed=0, row_tile=256):
    """x + dropout(relu(LN(x) @ W1 + b1) @ W2 + b2)."""
    B, S, H = x.shape
    d_ff = ffn['w1'].shape[1]
    rows = B * S
    rt = _choose_row_tile(rows, row_tile)
    x2, n_tiles = _pad_rows(x.reshape(rows, H).astype(jnp.float32), rt)
    kernel = functools.partial(_ffn_sublayer_kernel, eps=float(eps),
                               dropout_p=float(dropout_p))
    vmem_need = 4 * rt * H * 4 + 4 * H * d_ff * 2 + 4 * rt * d_ff * 4
    out = pl.pallas_call(
        kernel,
        out_shape=jax.ShapeDtypeStruct((n_tiles * rt, H), jnp.float32),
        grid_spec=pltpu.PrefetchScalarGridSpec(
            num_scalar_prefetch=1,
            grid=(n_tiles,),
            in_specs=[
                pl.BlockSpec((rt, H), lambda i, s: (i, 0)),
                pl.BlockSpec((1, H), lambda i, s: (0, 0)),
                pl.BlockSpec((1, H), lambda i, s: (0, 0)),
                pl.BlockSpec((H, d_ff), lambda i, s: (0, 0)),
                pl.BlockSpec((1, d_ff), lambda i, s: (0, 0)),
                pl.BlockSpec((d_ff, H), lambda i, s: (0, 0)),
                pl.BlockSpec((1, H), lambda i, s: (0, 0)),
            ],
            out_specs=pl.BlockSpec((rt, H), lambda i, s: (i, 0)),
        ),
        compiler_params=pltpu.CompilerParams(
            dimension_semantics=("parallel",),
            vmem_limit_bytes=_maybe_vmem_limit(vmem_need)),
        cost_estimate=pl.CostEstimate(
            flops=4 * rows * H * d_ff,
            transcendentals=0,
            bytes_accessed=2 * rows * H * 4 + 2 * H * d_ff * 2),
    )(jnp.array([seed], jnp.int32), x2, _vec(ln['g']), _vec(ln['b']),
      ffn['w1'].astype(jnp.bfloat16), _vec(ffn['b1']),
      ffn['w2'].astype(jnp.bfloat16), _vec(ffn['b2']))
    return out[:rows].reshape(B, S, H)


def attn_sublayer(x, kv, ln, attn, *, n_heads, self_attention, dropout_p=0.0,
                  eps=_EPS, seed=0):
    """x + dropout(MultiHeadedAttention(LN(x), kv, kv) @ Wo + bo)."""
    B, Sq, H = x.shape
    Skv = kv.shape[1]
    dk = H // n_heads
    assert dk * n_heads == H, "d_model must be divisible by n_heads"

    def split_qkv_w(w):      # (H, H) -> (n_heads, H, dk) bf16
        return w.reshape(H, n_heads, dk).transpose(1, 0, 2).astype(jnp.bfloat16)

    def split_qkv_b(bias):   # (H,) -> (n_heads, 1, dk) f32
        return bias.reshape(n_heads, 1, dk).astype(jnp.float32)

    kernel = functools.partial(_attn_sublayer_kernel, eps=float(eps),
                               n_heads=int(n_heads), dropout_p=float(dropout_p),
                               self_attention=bool(self_attention))
    vec_spec = pl.BlockSpec((1, H), lambda b, s: (0, 0))
    qkv_w_spec = pl.BlockSpec((n_heads, H, dk), lambda b, s: (0, 0, 0))
    qkv_b_spec = pl.BlockSpec((n_heads, 1, dk), lambda b, s: (0, 0, 0))
    vmem_need = 4 * (Sq + Skv) * H * 4 + 8 * H * H * 2
    out = pl.pallas_call(
        kernel,
        out_shape=jax.ShapeDtypeStruct((B, Sq, H), jnp.float32),
        grid_spec=pltpu.PrefetchScalarGridSpec(
            num_scalar_prefetch=1,
            grid=(B,),
            in_specs=[
                pl.BlockSpec((1, Sq, H), lambda b, s: (b, 0, 0)),
                pl.BlockSpec((1, Skv, H), lambda b, s: (b, 0, 0)),
                vec_spec, vec_spec,                       # gamma, beta
                qkv_w_spec, qkv_b_spec,                   # Wq, bq
                qkv_w_spec, qkv_b_spec,                   # Wk, bk
                qkv_w_spec, qkv_b_spec,                   # Wv, bv
                pl.BlockSpec((n_heads, dk, H), lambda b, s: (0, 0, 0)),   # Wo
                vec_spec,                                 # bo
            ],
            out_specs=pl.BlockSpec((1, Sq, H), lambda b, s: (b, 0, 0)),
        ),
        compiler_params=pltpu.CompilerParams(
            dimension_semantics=("parallel",),
            vmem_limit_bytes=_maybe_vmem_limit(vmem_need)),
        cost_estimate=pl.CostEstimate(
            flops=2 * B * H * H * (2 * Sq + 2 * Skv) + 4 * B * Sq * Skv * H,
            transcendentals=B * n_heads * Sq * Skv,
            bytes_accessed=(2 * B * Sq + B * Skv) * H * 4 + 4 * H * H * 2),
    )(jnp.array([seed], jnp.int32),
      x.astype(jnp.float32), kv.astype(jnp.float32),
      _vec(ln['g']), _vec(ln['b']),
      split_qkv_w(attn['wq']), split_qkv_b(attn['bq']),
      split_qkv_w(attn['wk']), split_qkv_b(attn['bk']),
      split_qkv_w(attn['wv']), split_qkv_b(attn['bv']),
      attn['wo'].reshape(n_heads, dk, H).astype(jnp.bfloat16), _vec(attn['bo']))
    return out


# --------------------------------------------------------------------------- #
# full Transformer forward (mirrors Transformer.forward control flow)
# --------------------------------------------------------------------------- #
def transformer_forward(params, x_src, x_trg, mask=None, *, n_heads,
                        dropout_p=0.0, eps=_EPS, seed=0):
    assert 0.0 <= dropout_p < 1.0, "dropout_p must be in [0, 1)"
    if mask is not None:
        raise NotImplementedError("TODO(synk): attention masking not implemented")
    counter = [int(seed)]

    def next_seed():
        counter[0] += 1
        return counter[0]

    x_trg_dec = embed_gelu(x_trg, params['embed_trg']['w'], params['embed_trg']['b'])
    if x_src.shape[1] > 0:
        x_src_enc = embed_gelu(x_src, params['embed_src']['w'],
                               params['embed_src']['b'])
        if x_src.shape[1] > 1:
            for layer in params['encoder']['layers']:
                x_src_enc = attn_sublayer(
                    x_src_enc, x_src_enc, layer['ln1'], layer['attn'],
                    n_heads=n_heads, self_attention=True, dropout_p=dropout_p,
                    eps=eps, seed=next_seed())
                x_src_enc = ffn_sublayer(
                    x_src_enc, layer['ln2'], layer['ffn'],
                    dropout_p=dropout_p, eps=eps, seed=next_seed())
            x_src_enc = layernorm(x_src_enc, params['encoder']['norm'], eps=eps)
        for layer in params['decoder']['layers']:
            x_trg_dec = attn_sublayer(
                x_trg_dec, x_src_enc, layer['ln1'], layer['attn'],
                n_heads=n_heads, self_attention=False, dropout_p=dropout_p,
                eps=eps, seed=next_seed())
            x_trg_dec = ffn_sublayer(
                x_trg_dec, layer['ln2'], layer['ffn'],
                dropout_p=dropout_p, eps=eps, seed=next_seed())
        x_trg_dec = layernorm(x_trg_dec, params['decoder']['norm'], eps=eps)
    return x_trg_dec


# --------------------------------------------------------------------------- #
# pure-JAX reference (mirrors the kernel's bf16/f32 numerics)
# --------------------------------------------------------------------------- #
def _ref_ln(x, g, b, eps=_EPS):
    m = jnp.mean(x, axis=-1, keepdims=True)
    c = x - m
    v = jnp.mean(c * c, axis=-1, keepdims=True)
    return c * lax.rsqrt(v + eps) * g + b


def _ref_dense(x, w, b):
    return jnp.einsum('...d,dk->...k', x.astype(jnp.bfloat16),
                      w.astype(jnp.bfloat16),
                      preferred_element_type=jnp.float32) + b


def _ref_attn_sublayer(x, kv, ln, attn, n_heads, eps):
    xn = _ref_ln(x, ln['g'], ln['b'], eps)
    kv_in = xn if kv is None else kv
    q = _ref_dense(xn, attn['wq'], attn['bq'])
    k = _ref_dense(kv_in, attn['wk'], attn['bk'])
    v = _ref_dense(kv_in, attn['wv'], attn['bv'])
    B, Sq, H = q.shape
    Skv = k.shape[1]
    dk = H // n_heads
    qh = q.reshape(B, Sq, n_heads, dk).transpose(0, 2, 1, 3)
    kh = k.reshape(B, Skv, n_heads, dk).transpose(0, 2, 1, 3)
    vh = v.reshape(B, Skv, n_heads, dk).transpose(0, 2, 1, 3)
    s = jnp.einsum('bhqd,bhkd->bhqk', qh, kh) * (1.0 / math.sqrt(dk))
    s = s - jnp.max(s, axis=-1, keepdims=True)
    e = jnp.exp(s)
    p = e / jnp.sum(e, axis=-1, keepdims=True)
    o = jnp.einsum('bhqk,bhkd->bhqd', p, vh)
    o = o.transpose(0, 2, 1, 3).reshape(B, Sq, H)
    return x + _ref_dense(o, attn['wo'], attn['bo'])


def _ref_ffn_sublayer(x, ln, ffn, eps):
    xn = _ref_ln(x, ln['g'], ln['b'], eps)
    h = jnp.maximum(_ref_dense(xn, ffn['w1'], ffn['b1']), 0.0)
    return x + _ref_dense(h, ffn['w2'], ffn['b2'])


def transformer_reference(params, x_src, x_trg, n_heads, eps=_EPS):
    x_trg_dec = jax.nn.gelu(_ref_dense(x_trg, params['embed_trg']['w'],
                                       params['embed_trg']['b']), approximate=True)
    if x_src.shape[1] > 0:
        x_src_enc = jax.nn.gelu(_ref_dense(x_src, params['embed_src']['w'],
                                           params['embed_src']['b']),
                                approximate=True)
        if x_src.shape[1] > 1:
            for layer in params['encoder']['layers']:
                x_src_enc = _ref_attn_sublayer(x_src_enc, None, layer['ln1'],
                                               layer['attn'], n_heads, eps)
                x_src_enc = _ref_ffn_sublayer(x_src_enc, layer['ln2'],
                                              layer['ffn'], eps)
            x_src_enc = _ref_ln(x_src_enc, params['encoder']['norm']['g'],
                                params['encoder']['norm']['b'], eps)
        for layer in params['decoder']['layers']:
            x_trg_dec = _ref_attn_sublayer(x_trg_dec, x_src_enc, layer['ln1'],
                                           layer['attn'], n_heads, eps)
            x_trg_dec = _ref_ffn_sublayer(x_trg_dec, layer['ln2'],
                                          layer['ffn'], eps)
        x_trg_dec = _ref_ln(x_trg_dec, params['decoder']['norm']['g'],
                            params['decoder']['norm']['b'], eps)
    return x_trg_dec


# --------------------------------------------------------------------------- #
# params + demo
# --------------------------------------------------------------------------- #
def init_params(key, *, d_in, d_trg, d_model, d_ff, n_layers):
    keys = iter(jax.random.split(key, 4 + 12 * n_layers))

    def dense(fan_in, fan_out):
        # weights_init_normal-style N(0, 0.02) init, zero bias.
        return {'w': 0.02 * jax.random.normal(next(keys), (fan_in, fan_out),
                                              jnp.float32),
                'b': jnp.zeros((fan_out,), jnp.float32)}

    def layer_norm():
        return {'g': jnp.ones((d_model,), jnp.float32),
                'b': jnp.zeros((d_model,), jnp.float32)}

    def attn_params():
        dq, dk_, dv, do = (dense(d_model, d_model) for _ in range(4))
        return {'wq': dq['w'], 'bq': dq['b'], 'wk': dk_['w'], 'bk': dk_['b'],
                'wv': dv['w'], 'bv': dv['b'], 'wo': do['w'], 'bo': do['b']}

    def ffn_params():
        d1, d2 = dense(d_model, d_ff), dense(d_ff, d_model)
        return {'w1': d1['w'], 'b1': d1['b'], 'w2': d2['w'], 'b2': d2['b']}

    def block():
        return {'layers': [{'attn': attn_params(), 'ffn': ffn_params(),
                            'ln1': layer_norm(), 'ln2': layer_norm()}
                           for _ in range(n_layers)],
                'norm': layer_norm()}

    return {'embed_src': dense(d_in, d_model),
            'embed_trg': dense(d_trg, d_model),
            'encoder': block(),
            'decoder': block()}


if __name__ == "__main__":
    root = jax.random.PRNGKey(0)
    k_par, k_src, k_trg = jax.random.split(root, 3)

    # Small shapes consistent with Transformer(d_in, d_trg, d_model, d_ff,
    # dropout, N_h, N_l) applied to (batch, seq, feature) inputs.
    d_in, d_trg, d_model, d_ff, n_heads, n_layers = 16, 16, 128, 256, 4, 2
    B, S_src, S_trg = 2, 8, 16

    params = init_params(k_par, d_in=d_in, d_trg=d_trg, d_model=d_model,
                         d_ff=d_ff, n_layers=n_layers)
    x_src = jax.random.normal(k_src, (B, S_src, d_in), jnp.float32)
    x_trg = jax.random.normal(k_trg, (B, S_trg, d_trg), jnp.float32)

    # Eval-mode forward (dropout identity), mask=None -- matches module semantics.
    out = transformer_forward(params, x_src, x_trg, n_heads=n_heads, dropout_p=0.0)
    out = jax.block_until_ready(out)
    assert out.shape == (B, S_trg, d_model)

    ref = transformer_reference(params, x_src, x_trg, n_heads)
    max_err = float(jnp.max(jnp.abs(out - ref)))
    assert jnp.allclose(out, ref, atol=1e-2, rtol=1e-2), f"mismatch: {max_err}"

    print("KERNEL_OK")
</pallas_src>

<mosaic_0001>
module attributes {stable_mosaic.version = 11 : i64} {
  func.func @_embed_gelu_kernel(%arg0: i32, %arg1: memref<32x16xf32, #tpu.memory_space<vmem>>, %arg2: memref<16x128xbf16, #tpu.memory_space<vmem>>, %arg3: memref<1x128xf32, #tpu.memory_space<vmem>>, %arg4: memref<32x128xf32, #tpu.memory_space<vmem>>) attributes {dimension_semantics = [#tpu.dimension_semantics<parallel>], iteration_bounds = array<i64: 1>, scalar_prefetch = 0 : i64, scratch_operands = 0 : i64, tpu.core_type = #tpu.core_type<tc>, window_params = [{transform_indices = @transform_0, window_bounds = array<i64: 32, 16>}, {pipeline_mode = #tpu.pipeline_mode<synchronous>, transform_indices = @transform_1, window_bounds = array<i64: 16, 128>}, {pipeline_mode = #tpu.pipeline_mode<synchronous>, transform_indices = @transform_2, window_bounds = array<i64: 1, 128>}, {transform_indices = @transform_3, window_bounds = array<i64: 32, 128>}]} {
    %c0 = arith.constant 0 : index
    %c0_0 = arith.constant 0 : index
    %0 = vector.load %arg1[%c0, %c0_0] : memref<32x16xf32, #tpu.memory_space<vmem>>, vector<32x16xf32>
    %1 = arith.truncf %0 : vector<32x16xf32> to vector<32x16xbf16>
    %c0_1 = arith.constant 0 : index
    %c0_2 = arith.constant 0 : index
    %2 = vector.load %arg2[%c0_1, %c0_2] : memref<16x128xbf16, #tpu.memory_space<vmem>>, vector<16x128xbf16>
    %cst = arith.constant dense<0.000000e+00> : vector<32x128xf32>
    %3 = tpu.matmul %1, %2, %cst {dimension_numbers = #tpu.dot_dimension_numbers<[1], [0], [0], [1], [0, 0, 1, 1], [], []>} : vector<32x16xbf16>, vector<16x128xbf16>, vector<32x128xf32> -> vector<32x128xf32>
    %c0_3 = arith.constant 0 : index
    %c0_4 = arith.constant 0 : index
    %4 = vector.load %arg3[%c0_3, %c0_4] : memref<1x128xf32, #tpu.memory_space<vmem>>, vector<1x128xf32>
    %5 = vector.broadcast %4 : vector<1x128xf32> to vector<32x128xf32>
    %6 = arith.addf %3, %5 : vector<32x128xf32>
    %7 = arith.mulf %6, %6 : vector<32x128xf32>
    %8 = arith.mulf %6, %7 : vector<32x128xf32>
    %cst_5 = arith.constant 4.471500e-02 : f32
    %9 = vector.broadcast %cst_5 : f32 to vector<32x128xf32>
    %10 = arith.mulf %9, %8 : vector<32x128xf32>
    %11 = arith.addf %6, %10 : vector<32x128xf32>
    %cst_6 = arith.constant 0.797884583 : f32
    %12 = vector.broadcast %cst_6 : f32 to vector<32x128xf32>
    %13 = arith.mulf %12, %11 : vector<32x128xf32>
    %14 = math.tanh %13 : vector<32x128xf32>
    %cst_7 = arith.constant 1.000000e+00 : f32
    %15 = vector.broadcast %cst_7 : f32 to vector<32x128xf32>
    %16 = arith.addf %15, %14 : vector<32x128xf32>
    %cst_8 = arith.constant 5.000000e-01 : f32
    %17 = vector.broadcast %cst_8 : f32 to vector<32x128xf32>
    %18 = arith.mulf %17, %16 : vector<32x128xf32>
    %19 = arith.mulf %6, %18 : vector<32x128xf32>
    %c0_9 = arith.constant 0 : index
    %c0_10 = arith.constant 0 : index
    %20 = vector.load %arg4[%c0_9, %c0_10] : memref<32x128xf32, #tpu.memory_space<vmem>>, vector<32x128xf32>
    tpu.vector_store %arg4[%c0_9, %c0_10], %19 {strides = array<i32>} : memref<32x128xf32, #tpu.memory_space<vmem>>, vector<32x128xf32>,
    return
  }
  func.func @transform_0(%arg0: i32) -> (i32, i32) {
    %c0_i32 = arith.constant 0 : i32
    %c0_i32_0 = arith.constant 0 : i32
    return %arg0, %c0_i32 : i32, i32
  }
  func.func @transform_1(%arg0: i32) -> (i32, i32) {
    %c0_i32 = arith.constant 0 : i32
    %c0_i32_0 = arith.constant 0 : i32
    %c0_i32_1 = arith.constant 0 : i32
    return %c0_i32, %c0_i32_0 : i32, i32
  }
  func.func @transform_2(%arg0: i32) -> (i32, i32) {
    %c0_i32 = arith.constant 0 : i32
    %c0_i32_0 = arith.constant 0 : i32
    %c0_i32_1 = arith.constant 0 : i32
    return %c0_i32, %c0_i32_0 : i32, i32
  }
  func.func @transform_3(%arg0: i32) -> (i32, i32) {
    %c0_i32 = arith.constant 0 : i32
    %c0_i32_0 = arith.constant 0 : i32
    return %arg0, %c0_i32 : i32, i32
  }
}

</mosaic_0001>

<bundles_post_ra>
// kernel: tpu_custom_call.1
= control target key start
LH: loop header
LB: loop body
LE: loop exit
PB: predicated region body
PF: predicated region fallthrough
CT: control target
= control target key end

     0   :  { %vm37_vm0 = vcmask 130048   ;;  %s251_s0 = inlined_call_operand.vmem [shape: f32[32,16], index: 0, kind: input, shape index: {}]   ;;  %s252_s1 = inlined_call_operand.vmem [shape: bf16[16,128], index: 1, kind: input, shape index: {}]   ;;  %s253_s2 = inlined_call_operand.vmem [shape: f32[1,128], index: 2, kind: input, shape index: {}]   ;;  %s254_s3 = inlined_call_operand.hbm [shape: f32[32,128], index: 3, kind: output, shape index: {}]  }
   0x1   :  { %v165_v0 = vld [vmem:[%s252_s1] sm:$0xff]   ;;  %v17_v2 = vld [vmem:[%s251_s0 + $0x8] sm:$0xff]  ;;  %v18_v3 = vld [vmem:[%s251_s0 + $0x10] sm:$0xff] }
   0x2   :  { %v16_v1 = vld [vmem:[%s251_s0] sm:$0xff]  ;;  %156 = vmatprep.subr.bf16.mxu0 %v165_v0  ;;  %v19_v5 = vld [vmem:[%s251_s0 + $0x18] sm:$0xff] }
   0x3   :  { %v20_v4 = vpack.c.bf16 %v17_v2, %v16_v1 }
   0x4   :  { %8 = vsyncpa [#allocation3], 0  ;;  %157 = vmatpush3.bf16.msra.mxu0 %v165_v0  ;;  %v21_v6 = vpack.c.bf16 %v19_v5, %v18_v3  ;;  %v149_v7 = vld [vmem:[%s253_s2] ss:$0 sm:$0xff]  ;;  %s198_s0 = smov [#allocation2]  }
   0x5   :  { %158 = vmatprep.mubr.msk.bf16.mxu0 %vm37_vm0, %v20_v4  ;;  %s138_s2 = sshll.u32 %s198_s0, 4  ;;  %s139_s2 = int_to_ptr.vmem [resolvable:$true] %s138_s2 }
   0x6   :  { %s174_s23 = scalar_lea.vmem %s139_s2, 512  ;;  %p179_p1 = scmp.lt.s32.totalorder %s139_s2, %s139_s2 }
   0x7   :  { %159 = vmatmul.mubr.msk.bf16.vlgmr.msra.gmra.mrb[0].mxu0 %vm37_vm0, %v21_v6  ;;  %p175_p0 = scmp.ne.s32.totalorder %s139_s2, %s174_s23  ;;  %p180_p2 = scmp.lt.s32.totalorder %s174_s23, %s174_s23 }
   0x9   :  { %p181_p3 = por %p180_p2, %p179_p1 }
   0xb   :  { %p182_p4 = pnand %p181_p3, %p175_p0 }
  0xda   :  { %v160_v8 = vpop.f32.mrb[0].mxu0 }
  0xdb   :  { %v87_v9 = vadd.f32 %v160_v8, %v149_v7  ;;  %v78_v10 = vpop.f32.mrb[1].mxu0 }
  0xdc   :  { %v79_v11 = vadd.f32 %v149_v7, %v78_v10  ;;  %v161_v12 = vpop.f32.mrb[2].mxu0 }
  0xdd   :  { %v95_v13 = vmul.f32 %v87_v9, %v87_v9  ;;  %v90_v14 = vadd.f32 %v161_v12, %v149_v7  ;;  %v81_v15 = vpop.f32.mrb[3].mxu0 }
  0xde   :  { %v93_v16 = vmul.f32 %v79_v11, %v79_v11  ;;  %v82_v17 = vadd.f32 %v149_v7, %v81_v15 }
  0xdf   :  { %v99_v18 = vmul.f32 %v95_v13, %v87_v9  ;;  %v96_v19 = vmul.f32 %v90_v14, %v90_v14 }
  0xe0   :  { %v97_v20 = vmul.f32 %v93_v16, %v79_v11  ;;  %v94_v21 = vmul.f32 %v82_v17, %v82_v17 }
  0xe1   :  { %v103_v22 = vmul.f32 0.044715, %v99_v18  ;;  %v100_v23 = vmul.f32 %v96_v19, %v90_v14 }
  0xe2   :  { %v101_v24 = vmul.f32 0.044715, %v97_v20  ;;  %v98_v25 = vmul.f32 %v94_v21, %v82_v17 }
  0xe3   :  { %v107_v26 = vadd.f32 %v103_v22, %v87_v9  ;;  %v104_v27 = vmul.f32 0.044715, %v100_v23 }
  0xe4   :  { %v105_v28 = vadd.f32 %v101_v24, %v79_v11  ;;  %v102_v29 = vmul.f32 0.044715, %v98_v25 }
  0xe5   :  { %v111_v30 = vmul.f32 0.7978846, %v107_v26  ;;  %v108_v31 = vadd.f32 %v104_v27, %v90_v14 }
  0xe6   :  { %v109_v32 = vmul.f32 0.7978846, %v105_v28  ;;  %v106_v33 = vadd.f32 %v102_v29, %v82_v17 }
  0xe7   :  { %166 = vtanh.f32 %v111_v30  ;;  %v112_v34 = vmul.f32 0.7978846, %v108_v31 }
  0xe8   :  { %168 = vtanh.f32 %v109_v32  ;;  %v110_v35 = vmul.f32 0.7978846, %v106_v33 }
  0xe9   :  { %170 = vtanh.f32 %v112_v34 }
  0xea   :  { %172 = vtanh.f32 %v110_v35 }
  0xf1   :  { %v167_v36 = vpop.eup %166 }
  0xf2   :  { %v169_v37 = vpop.eup %168  ;;  %v119_v38 = vadd.f32 1.0, %v167_v36 }
  0xf3   :  { %v171_v39 = vpop.eup %170  ;;  %v117_v40 = vadd.f32 1.0, %v169_v37 }
  0xf4   :  { %v173_v41 = vpop.eup %172  ;;  %v123_v42 = vmul.f32 0.5, %v119_v38  ;;  %v120_v43 = vadd.f32 1.0, %v171_v39 }
  0xf5   :  { %v121_v44 = vmul.f32 0.5, %v117_v40  ;;  %v118_v45 = vadd.f32 1.0, %v173_v41 }
  0xf6   :  { %v127_v46 = vmul.f32 %v123_v42, %v87_v9  ;;  %v124_v47 = vmul.f32 0.5, %v120_v43 }
  0xf7   :  { %v125_v48 = vmul.f32 %v121_v44, %v79_v11  ;;  %v122_v49 = vmul.f32 0.5, %v118_v45 }
  0xf8   :  { %131 = vst [vmem:[#allocation2 + $0x10] sm:$0xff] %v127_v46  ;;  %v128_v50 = vmul.f32 %v124_v47, %v90_v14 }
  0xf9   :  { %129 = vst [vmem:[#allocation2] sm:$0xff] %v125_v48  ;;  %v126_v51 = vmul.f32 %v122_v49, %v82_v17 }
  0xfa   :  { %132 = vst [vmem:[#allocation2 + $0x18] sm:$0xff] %v128_v50 }
  0xfb   :  { %130 = vst [vmem:[#allocation2 + $0x8] sm:$0xff] %v126_v51 }
  0xfc   :  { %185 = shalt.err (!%p182_p4)
}
  0xfd   :  { %s186_s26 = scalar_lea.hbm %s254_s3, 512 }
  0xfe   :  { %p187_p5 = scmp.ne.s32.totalorder %s254_s3, %s186_s26  ;;  %p190_p6 = scmp.lt.u32.totalorder %s186_s26, %s254_s3 }
 0x100   :  { %p192_p7 = pnand %p190_p6, %p187_p5 }
 0x102   :  { %195 = shalt.err (!%p192_p7)
}
 0x103   :  { %s199_s4 = smov 128   ;;  %s200_s5 = smov 8  }
 0x104   :  { %144 = dma.vmem_to_hbm [thread:$0]  %s139_s2, 512, %s254_s3, [#allocation3], %s199_s4, %s199_s4, %s200_s5  }
 0x105   :  { %196 = dma.done.wait [#allocation3], 512  }
 0x106   :  { %197 = vsyncadd [#allocation3], 4294966784 }
 0x107   :  { %148 = vsyncpa [#allocation3], 1 }

</bundles_post_ra>
